<compile_context>
chip_gen: v7x
topology: tpu7x:2x2x1
jax: 0.10.0
libtpu: 0.0.40
codegen_flags: <defaults>
</compile_context>

<pallas_src>
import jax
import jax.numpy as jnp
from jax.experimental import pallas as pl
from jax.experimental.pallas import tpu as pltpu

EPS = 1e-5
# bf16 MXU operands (f32 accumulation) — native MXU dtype on v5e/v6e/v7x.
# Set to jnp.float32 for bit-closer parity with the f32 PyTorch convs.
MATMUL_DTYPE = jnp.bfloat16


def residual_block(x_nchw, p):
    N, Cin, H, W = x_nchw.shape
    Cout = p["w1"].shape[0]
    P = N * H * W                      # lane axis: batch folded into spatial

    # --- wrapper-side (XLA) layout plumbing: lane-dense (C, N*H*W) slabs ---
    x2d = jnp.transpose(x_nchw, (1, 0, 2, 3)).reshape(Cin, P)

    # OIHW -> (Cout, (kh, kw, ci)) to match the in-kernel tap ordering.
    w1_2d = jnp.transpose(p["w1"], (0, 2, 3, 1)).reshape(Cout, 9 * Cin)
    w2_2d = jnp.transpose(p["w2"], (0, 2, 3, 1)).reshape(Cout, 9 * Cout)
    # Fuse the 1x1 shortcut into conv1: embed w3 in the center-tap columns and
    # stack below w1 -> one (2*Cout, 9*Cin) matmul for conv1 + shortcut.
    w3_pad = jnp.concatenate(
        [jnp.zeros((Cout, 4 * Cin), jnp.float32), p["w3"],
         jnp.zeros((Cout, 4 * Cin), jnp.float32)], axis=1)
    w1c_2d = jnp.concatenate([w1_2d, w3_pad], axis=0).astype(MATMUL_DTYPE)
    w2_2d = w2_2d.astype(MATMUL_DTYPE)

    b3 = p["b3"].reshape(Cout, 1)
    g1 = p["g1"].reshape(Cout, 1)
    be1 = p["be1"].reshape(Cout, 1)
    g2 = p["g2"].reshape(Cout, 1)
    be2 = p["be2"].reshape(Cout, 1)
    # b1 / b2 intentionally unused: a bias added before BN is cancelled exactly
    # by the BN mean subtraction.

    # Per-tap validity masks over the flat (n, h, w) lane axis: column edges
    # for the dw=+/-1 taps and row / image-seam edges for the dh=+/-1 taps
    # (also cover the roll wrap-around at the ends of the flat axis).
    col = jnp.arange(W)
    row = jnp.arange(H)
    cmask = {0: jnp.ones((W,), jnp.float32),
             1: (col < W - 1).astype(jnp.float32),
             -1: (col > 0).astype(jnp.float32)}
    rmask = {0: jnp.ones((H,), jnp.float32),
             1: (row < H - 1).astype(jnp.float32),
             -1: (row > 0).astype(jnp.float32)}
    masks = jnp.stack(
        [jnp.tile((rmask[kh - 1][:, None] * cmask[kw - 1][None, :]).reshape(H * W), N)
         for kh in range(3) for kw in range(3)], axis=0)          # (9, P)

    tap_deltas = [(kh - 1) * W + (kw - 1) for kh in range(3) for kw in range(3)]

    def kernel(x_ref, w1c_ref, w2_ref, b3_ref, g1_ref, be1_ref, g2_ref,
               be2_ref, m_ref, o_ref):
        x = x_ref[...]                                            # (Cin, P) f32
        mrows = [m_ref[k:k + 1, :] for k in range(9)]             # (1, P) each

        def im2col(v):
            # (C, P) -> (9*C, P); taps in (kh, kw) row-major order, channels
            # fastest -- matches the w*_2d reshape in the wrapper.  Each tap is
            # an XLU lane rotation plus one VPU mask multiply; cast to the
            # matmul dtype once, after the concat.
            pieces = []
            for k, d in enumerate(tap_deltas):
                if d == 0:
                    pieces.append(v)
                else:
                    t = pltpu.roll(v, (-d) % P, axis=1)           # t[p] = v[p+d]
                    pieces.append(t * mrows[k])
            return jnp.concatenate(pieces, axis=0).astype(MATMUL_DTYPE)

        def batchnorm(a, g, be):
            # Training-mode BN over (N, H, W) per channel == a single lane
            # reduction per row; fused sum / sumsq, folded scale/offset; rsqrt
            # stays on the EUP.
            inv_m = 1.0 / P
            s = jnp.sum(a, axis=-1, keepdims=True)
            ss = jnp.sum(a * a, axis=-1, keepdims=True)
            mean = s * inv_m
            var = ss * inv_m - mean * mean
            scale = g * jax.lax.rsqrt(var + EPS)
            offset = be - mean * scale
            return a * scale + offset

        # conv1 (3x3, pad 1) + fused 1x1 shortcut: ONE MXU matmul, f32 acc.
        y = jnp.dot(w1c_ref[...], im2col(x),
                    preferred_element_type=jnp.float32)           # (2*Cout, P)
        sc = y[Cout:, :] + b3_ref[...]                            # shortcut
        y1 = jnp.maximum(batchnorm(y[:Cout, :], g1_ref[...], be1_ref[...]), 0.0)
        # conv2 (3x3, pad 1) -> bn2
        y2 = batchnorm(jnp.dot(w2_ref[...], im2col(y1),
                               preferred_element_type=jnp.float32),
                       g2_ref[...], be2_ref[...])
        # residual add + final relu (lane-dense unmasked store: last dim = P).
        o_ref[...] = jnp.maximum(y2 + sc, 0.0)

    def full(shape):
        return pl.BlockSpec(shape, lambda i, s=shape: (0,) * len(s))

    args = (x2d, w1c_2d, w2_2d, b3, g1, be1, g2, be2, masks)

    out2d = pl.pallas_call(
        kernel,
        grid=(1,),
        in_specs=[full(a.shape) for a in args],
        out_specs=full((Cout, P)),
        out_shape=jax.ShapeDtypeStruct((Cout, P), jnp.float32),
        compiler_params=pltpu.CompilerParams(
            dimension_semantics=("arbitrary",),
            # tiny footprint; 32 MiB is valid on v5e/v6e and inside v7x's 64 MiB
            vmem_limit_bytes=32 * 1024 * 1024),
    )(*args)
    return jnp.transpose(out2d.reshape(Cout, N, H, W), (1, 0, 2, 3))


def init_params(key, cin, cout):
    ks = jax.random.split(key, 6)
    return dict(
        w1=jax.random.normal(ks[0], (cout, cin, 3, 3), jnp.float32) * 0.1,   # OIHW
        b1=jax.random.normal(ks[1], (cout,), jnp.float32) * 0.1,
        w2=jax.random.normal(ks[2], (cout, cout, 3, 3), jnp.float32) * 0.1,  # OIHW
        b2=jax.random.normal(ks[3], (cout,), jnp.float32) * 0.1,
        w3=jax.random.normal(ks[4], (cout, cin), jnp.float32) * 0.1,         # 1x1 conv
        b3=jax.random.normal(ks[5], (cout,), jnp.float32) * 0.1,
        g1=jnp.ones((cout,), jnp.float32), be1=jnp.zeros((cout,), jnp.float32),
        g2=jnp.ones((cout,), jnp.float32), be2=jnp.zeros((cout,), jnp.float32),
    )


def reference_nchw(x, p):
    """Pure-JAX reference mirroring the PyTorch forward (training-mode BN).

    It *does* apply the conv biases b1/b2, demonstrating that dropping them in
    the kernel (they cancel under BN) is numerically equivalent.
    """
    def conv(inp, w, b, pad):
        y = jax.lax.conv_general_dilated(
            inp, w, window_strides=(1, 1), padding=pad,
            dimension_numbers=("NCHW", "OIHW", "NCHW"))
        return y + b.reshape(1, -1, 1, 1)

    def bn(y, g, be):
        m = jnp.mean(y, axis=(0, 2, 3), keepdims=True)
        v = jnp.mean((y - m) ** 2, axis=(0, 2, 3), keepdims=True)
        return (y - m) * jax.lax.rsqrt(v + EPS) * g.reshape(1, -1, 1, 1) \
               + be.reshape(1, -1, 1, 1)

    y = jax.nn.relu(bn(conv(x, p["w1"], p["b1"], ((1, 1), (1, 1))), p["g1"], p["be1"]))
    y = bn(conv(y, p["w2"], p["b2"], ((1, 1), (1, 1))), p["g2"], p["be2"])
    sc = conv(x, p["w3"][:, :, None, None], p["b3"], ((0, 0), (0, 0)))
    return jax.nn.relu(y + sc)


if __name__ == "__main__":
    key = jax.random.PRNGKey(0)
    kx, kp = jax.random.split(key)

    N, Cin, H, W = 2, 4, 16, 16
    Cout = 8

    x = jax.random.normal(kx, (N, Cin, H, W), jnp.float32)   # NCHW, PyTorch layout
    params = init_params(kp, Cin, Cout)

    out = jax.block_until_ready(residual_block(x, params))
    ref = reference_nchw(x, params)

    assert out.shape == (N, Cout, H, W)
    # bf16 MXU operands widen the parity band vs. the f32 PyTorch reference;
    # the f32 path (MATMUL_DTYPE=jnp.float32) matches at 2e-3.
    tol = 2e-3 if MATMUL_DTYPE == jnp.float32 else 3e-2
    err = jnp.max(jnp.abs(out - ref))
    assert jnp.allclose(out, ref, atol=tol, rtol=tol), \
        f"mismatch vs reference (max abs err {err})"

    print("KERNEL_OK")
</pallas_src>

<mosaic_0001>
module attributes {stable_mosaic.version = 11 : i64} {
  func.func @kernel(%arg0: i32, %arg1: memref<4x512xf32, #tpu.memory_space<vmem>>, %arg2: memref<16x36xbf16, #tpu.memory_space<vmem>>, %arg3: memref<8x72xbf16, #tpu.memory_space<vmem>>, %arg4: memref<8x1xf32, #tpu.memory_space<vmem>>, %arg5: memref<8x1xf32, #tpu.memory_space<vmem>>, %arg6: memref<8x1xf32, #tpu.memory_space<vmem>>, %arg7: memref<8x1xf32, #tpu.memory_space<vmem>>, %arg8: memref<8x1xf32, #tpu.memory_space<vmem>>, %arg9: memref<9x512xf32, #tpu.memory_space<vmem>>, %arg10: memref<8x512xf32, #tpu.memory_space<vmem>>) attributes {dimension_semantics = [#tpu.dimension_semantics<arbitrary>], iteration_bounds = array<i64: 1>, scalar_prefetch = 0 : i64, scratch_operands = 0 : i64, tpu.core_type = #tpu.core_type<tc>, window_params = [{pipeline_mode = #tpu.pipeline_mode<synchronous>, transform_indices = @transform_0, window_bounds = array<i64: 4, 512>}, {pipeline_mode = #tpu.pipeline_mode<synchronous>, transform_indices = @transform_1, window_bounds = array<i64: 16, 36>}, {pipeline_mode = #tpu.pipeline_mode<synchronous>, transform_indices = @transform_2, window_bounds = array<i64: 8, 72>}, {pipeline_mode = #tpu.pipeline_mode<synchronous>, transform_indices = @transform_3, window_bounds = array<i64: 8, 1>}, {pipeline_mode = #tpu.pipeline_mode<synchronous>, transform_indices = @transform_4, window_bounds = array<i64: 8, 1>}, {pipeline_mode = #tpu.pipeline_mode<synchronous>, transform_indices = @transform_5, window_bounds = array<i64: 8, 1>}, {pipeline_mode = #tpu.pipeline_mode<synchronous>, transform_indices = @transform_6, window_bounds = array<i64: 8, 1>}, {pipeline_mode = #tpu.pipeline_mode<synchronous>, transform_indices = @transform_7, window_bounds = array<i64: 8, 1>}, {pipeline_mode = #tpu.pipeline_mode<synchronous>, transform_indices = @transform_8, window_bounds = array<i64: 9, 512>}, {pipeline_mode = #tpu.pipeline_mode<synchronous>, transform_indices = @transform_9, window_bounds = array<i64: 8, 512>}]} {
    %c0 = arith.constant 0 : index
    %c0_0 = arith.constant 0 : index
    %0 = vector.load %arg1[%c0, %c0_0] : memref<4x512xf32, #tpu.memory_space<vmem>>, vector<4x512xf32>
    %c0_1 = arith.constant 0 : index
    %c0_2 = arith.constant 0 : index
    %1 = vector.load %arg9[%c0_1, %c0_2] : memref<9x512xf32, #tpu.memory_space<vmem>>, vector<1x512xf32>
    %c1 = arith.constant 1 : index
    %c0_3 = arith.constant 0 : index
    %2 = vector.load %arg9[%c1, %c0_3] : memref<9x512xf32, #tpu.memory_space<vmem>>, vector<1x512xf32>
    %c2 = arith.constant 2 : index
    %c0_4 = arith.constant 0 : index
    %3 = vector.load %arg9[%c2, %c0_4] : memref<9x512xf32, #tpu.memory_space<vmem>>, vector<1x512xf32>
    %c3 = arith.constant 3 : index
    %c0_5 = arith.constant 0 : index
    %4 = vector.load %arg9[%c3, %c0_5] : memref<9x512xf32, #tpu.memory_space<vmem>>, vector<1x512xf32>
    %c5 = arith.constant 5 : index
    %c0_6 = arith.constant 0 : index
    %5 = vector.load %arg9[%c5, %c0_6] : memref<9x512xf32, #tpu.memory_space<vmem>>, vector<1x512xf32>
    %c6 = arith.constant 6 : index
    %c0_7 = arith.constant 0 : index
    %6 = vector.load %arg9[%c6, %c0_7] : memref<9x512xf32, #tpu.memory_space<vmem>>, vector<1x512xf32>
    %c7 = arith.constant 7 : index
    %c0_8 = arith.constant 0 : index
    %7 = vector.load %arg9[%c7, %c0_8] : memref<9x512xf32, #tpu.memory_space<vmem>>, vector<1x512xf32>
    %c8 = arith.constant 8 : index
    %c0_9 = arith.constant 0 : index
    %8 = vector.load %arg9[%c8, %c0_9] : memref<9x512xf32, #tpu.memory_space<vmem>>, vector<1x512xf32>
    %c0_10 = arith.constant 0 : index
    %c0_11 = arith.constant 0 : index
    %9 = vector.load %arg2[%c0_10, %c0_11] : memref<16x36xbf16, #tpu.memory_space<vmem>>, vector<16x36xbf16>
    %c17_i32 = arith.constant 17 : i32
    %10 = tpu.dynamic_rotate %0 by %c17_i32 dim 1 : vector<4x512xf32>, i32 -> vector<4x512xf32>
    %11 = vector.broadcast %1 : vector<1x512xf32> to vector<4x512xf32>
    %12 = arith.mulf %10, %11 : vector<4x512xf32>
    %c16_i32 = arith.constant 16 : i32
    %13 = tpu.dynamic_rotate %0 by %c16_i32 dim 1 : vector<4x512xf32>, i32 -> vector<4x512xf32>
    %14 = vector.broadcast %2 : vector<1x512xf32> to vector<4x512xf32>
    %15 = arith.mulf %13, %14 : vector<4x512xf32>
    %c15_i32 = arith.constant 15 : i32
    %16 = tpu.dynamic_rotate %0 by %c15_i32 dim 1 : vector<4x512xf32>, i32 -> vector<4x512xf32>
    %17 = vector.broadcast %3 : vector<1x512xf32> to vector<4x512xf32>
    %18 = arith.mulf %16, %17 : vector<4x512xf32>
    %c1_i32 = arith.constant 1 : i32
    %19 = tpu.dynamic_rotate %0 by %c1_i32 dim 1 : vector<4x512xf32>, i32 -> vector<4x512xf32>
    %20 = vector.broadcast %4 : vector<1x512xf32> to vector<4x512xf32>
    %21 = arith.mulf %19, %20 : vector<4x512xf32>
    %c511_i32 = arith.constant 511 : i32
    %22 = tpu.dynamic_rotate %0 by %c511_i32 dim 1 : vector<4x512xf32>, i32 -> vector<4x512xf32>
    %23 = vector.broadcast %5 : vector<1x512xf32> to vector<4x512xf32>
    %24 = arith.mulf %22, %23 : vector<4x512xf32>
    %c497_i32 = arith.constant 497 : i32
    %25 = tpu.dynamic_rotate %0 by %c497_i32 dim 1 : vector<4x512xf32>, i32 -> vector<4x512xf32>
    %26 = vector.broadcast %6 : vector<1x512xf32> to vector<4x512xf32>
    %27 = arith.mulf %25, %26 : vector<4x512xf32>
    %c496_i32 = arith.constant 496 : i32
    %28 = tpu.dynamic_rotate %0 by %c496_i32 dim 1 : vector<4x512xf32>, i32 -> vector<4x512xf32>
    %29 = vector.broadcast %7 : vector<1x512xf32> to vector<4x512xf32>
    %30 = arith.mulf %28, %29 : vector<4x512xf32>
    %c495_i32 = arith.constant 495 : i32
    %31 = tpu.dynamic_rotate %0 by %c495_i32 dim 1 : vector<4x512xf32>, i32 -> vector<4x512xf32>
    %32 = vector.broadcast %8 : vector<1x512xf32> to vector<4x512xf32>
    %33 = arith.mulf %31, %32 : vector<4x512xf32>
    %34 = tpu.concatenate %12, %15, %18, %21, %0, %24, %27, %30, %33 in 0 : vector<4x512xf32>, vector<4x512xf32>, vector<4x512xf32>, vector<4x512xf32>, vector<4x512xf32>, vector<4x512xf32>, vector<4x512xf32>, vector<4x512xf32>, vector<4x512xf32> -> vector<36x512xf32>
    %35 = arith.truncf %34 : vector<36x512xf32> to vector<36x512xbf16>
    %cst = arith.constant dense<0.000000e+00> : vector<16x512xf32>
    %36 = tpu.matmul %9, %35, %cst {dimension_numbers = #tpu.dot_dimension_numbers<[1], [0], [0], [1], [0, 0, 1, 1], [], []>} : vector<16x36xbf16>, vector<36x512xbf16>, vector<16x512xf32> -> vector<16x512xf32>
    %37 = vector.extract_strided_slice %36 {offsets = [8, 0], sizes = [8, 512], strides = [1, 1]} : vector<16x512xf32> to vector<8x512xf32>
    %c0_12 = arith.constant 0 : index
    %c0_13 = arith.constant 0 : index
    %38 = vector.load %arg4[%c0_12, %c0_13] : memref<8x1xf32, #tpu.memory_space<vmem>>, vector<8x1xf32>
    %39 = vector.broadcast %38 : vector<8x1xf32> to vector<8x512xf32>
    %40 = arith.addf %37, %39 : vector<8x512xf32>
    %41 = vector.extract_strided_slice %36 {offsets = [0, 0], sizes = [8, 512], strides = [1, 1]} : vector<16x512xf32> to vector<8x512xf32>
    %c0_14 = arith.constant 0 : index
    %c0_15 = arith.constant 0 : index
    %42 = vector.load %arg5[%c0_14, %c0_15] : memref<8x1xf32, #tpu.memory_space<vmem>>, vector<8x1xf32>
    %c0_16 = arith.constant 0 : index
    %c0_17 = arith.constant 0 : index
    %43 = vector.load %arg6[%c0_16, %c0_17] : memref<8x1xf32, #tpu.memory_space<vmem>>, vector<8x1xf32>
    %cst_18 = arith.constant dense<0.000000e+00> : vector<8xf32>
    %44 = vector.multi_reduction <add>, %41, %cst_18 [1] : vector<8x512xf32> to vector<8xf32>
    %45 = vector.shape_cast %44 : vector<8xf32> to vector<8x1xf32>
    %46 = arith.mulf %41, %41 : vector<8x512xf32>
    %cst_19 = arith.constant dense<0.000000e+00> : vector<8xf32>
    %47 = vector.multi_reduction <add>, %46, %cst_19 [1] : vector<8x512xf32> to vector<8xf32>
    %48 = vector.shape_cast %47 : vector<8xf32> to vector<8x1xf32>
    %cst_20 = arith.constant 0.001953125 : f32
    %49 = vector.broadcast %cst_20 : f32 to vector<8x1xf32>
    %50 = arith.mulf %45, %49 : vector<8x1xf32>
    %cst_21 = arith.constant 0.001953125 : f32
    %51 = vector.broadcast %cst_21 : f32 to vector<8x1xf32>
    %52 = arith.mulf %48, %51 : vector<8x1xf32>
    %53 = arith.mulf %50, %50 : vector<8x1xf32>
    %54 = arith.subf %52, %53 : vector<8x1xf32>
    %cst_22 = arith.constant 9.99999974E-6 : f32
    %55 = vector.broadcast %cst_22 : f32 to vector<8x1xf32>
    %56 = arith.addf %54, %55 : vector<8x1xf32>
    %57 = math.rsqrt %56 : vector<8x1xf32>
    %58 = arith.mulf %42, %57 : vector<8x1xf32>
    %59 = arith.mulf %50, %58 : vector<8x1xf32>
    %60 = arith.subf %43, %59 : vector<8x1xf32>
    %61 = vector.broadcast %58 : vector<8x1xf32> to vector<8x512xf32>
    %62 = arith.mulf %41, %61 : vector<8x512xf32>
    %63 = vector.broadcast %60 : vector<8x1xf32> to vector<8x512xf32>
    %64 = arith.addf %62, %63 : vector<8x512xf32>
    %cst_23 = arith.constant 0.000000e+00 : f32
    %65 = vector.broadcast %cst_23 : f32 to vector<8x512xf32>
    %66 = arith.maximumf %64, %65 : vector<8x512xf32>
    %c0_24 = arith.constant 0 : index
    %c0_25 = arith.constant 0 : index
    %67 = vector.load %arg3[%c0_24, %c0_25] : memref<8x72xbf16, #tpu.memory_space<vmem>>, vector<8x72xbf16>
    %c17_i32_26 = arith.constant 17 : i32
    %68 = tpu.dynamic_rotate %66 by %c17_i32_26 dim 1 : vector<8x512xf32>, i32 -> vector<8x512xf32>
    %69 = vector.broadcast %1 : vector<1x512xf32> to vector<8x512xf32>
    %70 = arith.mulf %68, %69 : vector<8x512xf32>
    %c16_i32_27 = arith.constant 16 : i32
    %71 = tpu.dynamic_rotate %66 by %c16_i32_27 dim 1 : vector<8x512xf32>, i32 -> vector<8x512xf32>
    %72 = vector.broadcast %2 : vector<1x512xf32> to vector<8x512xf32>
    %73 = arith.mulf %71, %72 : vector<8x512xf32>
    %c15_i32_28 = arith.constant 15 : i32
    %74 = tpu.dynamic_rotate %66 by %c15_i32_28 dim 1 : vector<8x512xf32>, i32 -> vector<8x512xf32>
    %75 = vector.broadcast %3 : vector<1x512xf32> to vector<8x512xf32>
    %76 = arith.mulf %74, %75 : vector<8x512xf32>
    %c1_i32_29 = arith.constant 1 : i32
    %77 = tpu.dynamic_rotate %66 by %c1_i32_29 dim 1 : vector<8x512xf32>, i32 -> vector<8x512xf32>
    %78 = vector.broadcast %4 : vector<1x512xf32> to vector<8x512xf32>
    %79 = arith.mulf %77, %78 : vector<8x512xf32>
    %c511_i32_30 = arith.constant 511 : i32
    %80 = tpu.dynamic_rotate %66 by %c511_i32_30 dim 1 : vector<8x512xf32>, i32 -> vector<8x512xf32>
    %81 = vector.broadcast %5 : vector<1x512xf32> to vector<8x512xf32>
    %82 = arith.mulf %80, %81 : vector<8x512xf32>
    %c497_i32_31 = arith.constant 497 : i32
    %83 = tpu.dynamic_rotate %66 by %c497_i32_31 dim 1 : vector<8x512xf32>, i32 -> vector<8x512xf32>
    %84 = vector.broadcast %6 : vector<1x512xf32> to vector<8x512xf32>
    %85 = arith.mulf %83, %84 : vector<8x512xf32>
    %c496_i32_32 = arith.constant 496 : i32
    %86 = tpu.dynamic_rotate %66 by %c496_i32_32 dim 1 : vector<8x512xf32>, i32 -> vector<8x512xf32>
    %87 = vector.broadcast %7 : vector<1x512xf32> to vector<8x512xf32>
    %88 = arith.mulf %86, %87 : vector<8x512xf32>
    %c495_i32_33 = arith.constant 495 : i32
    %89 = tpu.dynamic_rotate %66 by %c495_i32_33 dim 1 : vector<8x512xf32>, i32 -> vector<8x512xf32>
    %90 = vector.broadcast %8 : vector<1x512xf32> to vector<8x512xf32>
    %91 = arith.mulf %89, %90 : vector<8x512xf32>
    %92 = tpu.concatenate %70, %73, %76, %79, %66, %82, %85, %88, %91 in 0 : vector<8x512xf32>, vector<8x512xf32>, vector<8x512xf32>, vector<8x512xf32>, vector<8x512xf32>, vector<8x512xf32>, vector<8x512xf32>, vector<8x512xf32>, vector<8x512xf32> -> vector<72x512xf32>
    %93 = arith.truncf %92 : vector<72x512xf32> to vector<72x512xbf16>
    %cst_34 = arith.constant dense<0.000000e+00> : vector<8x512xf32>
    %94 = tpu.matmul %67, %93, %cst_34 {dimension_numbers = #tpu.dot_dimension_numbers<[1], [0], [0], [1], [0, 0, 1, 1], [], []>} : vector<8x72xbf16>, vector<72x512xbf16>, vector<8x512xf32> -> vector<8x512xf32>
    %c0_35 = arith.constant 0 : index
    %c0_36 = arith.constant 0 : index
    %95 = vector.load %arg7[%c0_35, %c0_36] : memref<8x1xf32, #tpu.memory_space<vmem>>, vector<8x1xf32>
    %c0_37 = arith.constant 0 : index
    %c0_38 = arith.constant 0 : index
    %96 = vector.load %arg8[%c0_37, %c0_38] : memref<8x1xf32, #tpu.memory_space<vmem>>, vector<8x1xf32>
    %cst_39 = arith.constant dense<0.000000e+00> : vector<8xf32>
    %97 = vector.multi_reduction <add>, %94, %cst_39 [1] : vector<8x512xf32> to vector<8xf32>
    %98 = vector.shape_cast %97 : vector<8xf32> to vector<8x1xf32>
    %99 = arith.mulf %94, %94 : vector<8x512xf32>
    %cst_40 = arith.constant dense<0.000000e+00> : vector<8xf32>
    %100 = vector.multi_reduction <add>, %99, %cst_40 [1] : vector<8x512xf32> to vector<8xf32>
    %101 = vector.shape_cast %100 : vector<8xf32> to vector<8x1xf32>
    %cst_41 = arith.constant 0.001953125 : f32
    %102 = vector.broadcast %cst_41 : f32 to vector<8x1xf32>
    %103 = arith.mulf %98, %102 : vector<8x1xf32>
    %cst_42 = arith.constant 0.001953125 : f32
    %104 = vector.broadcast %cst_42 : f32 to vector<8x1xf32>
    %105 = arith.mulf %101, %104 : vector<8x1xf32>
    %106 = arith.mulf %103, %103 : vector<8x1xf32>
    %107 = arith.subf %105, %106 : vector<8x1xf32>
    %cst_43 = arith.constant 9.99999974E-6 : f32
    %108 = vector.broadcast %cst_43 : f32 to vector<8x1xf32>
    %109 = arith.addf %107, %108 : vector<8x1xf32>
    %110 = math.rsqrt %109 : vector<8x1xf32>
    %111 = arith.mulf %95, %110 : vector<8x1xf32>
    %112 = arith.mulf %103, %111 : vector<8x1xf32>
    %113 = arith.subf %96, %112 : vector<8x1xf32>
    %114 = vector.broadcast %111 : vector<8x1xf32> to vector<8x512xf32>
    %115 = arith.mulf %94, %114 : vector<8x512xf32>
    %116 = vector.broadcast %113 : vector<8x1xf32> to vector<8x512xf32>
    %117 = arith.addf %115, %116 : vector<8x512xf32>
    %118 = arith.addf %117, %40 : vector<8x512xf32>
    %cst_44 = arith.constant 0.000000e+00 : f32
    %119 = vector.broadcast %cst_44 : f32 to vector<8x512xf32>
    %120 = arith.maximumf %118, %119 : vector<8x512xf32>
    %c0_45 = arith.constant 0 : index
    %c0_46 = arith.constant 0 : index
    %121 = vector.load %arg10[%c0_45, %c0_46] : memref<8x512xf32, #tpu.memory_space<vmem>>, vector<8x512xf32>
    tpu.vector_store %arg10[%c0_45, %c0_46], %120 {strides = array<i32>} : memref<8x512xf32, #tpu.memory_space<vmem>>, vector<8x512xf32>,
    return
  }
  func.func @transform_0(%arg0: i32) -> (i32, i32) {
    %c0_i32 = arith.constant 0 : i32
    %c0_i32_0 = arith.constant 0 : i32
    %c0_i32_1 = arith.constant 0 : i32
    return %c0_i32, %c0_i32_0 : i32, i32
  }
  func.func @transform_1(%arg0: i32) -> (i32, i32) {
    %c0_i32 = arith.constant 0 : i32
    %c0_i32_0 = arith.constant 0 : i32
    %c0_i32_1 = arith.constant 0 : i32
    return %c0_i32, %c0_i32_0 : i32, i32
  }
  func.func @transform_2(%arg0: i32) -> (i32, i32) {
    %c0_i32 = arith.constant 0 : i32
    %c0_i32_0 = arith.constant 0 : i32
    %c0_i32_1 = arith.constant 0 : i32
    return %c0_i32, %c0_i32_0 : i32, i32
  }
  func.func @transform_3(%arg0: i32) -> (i32, i32) {
    %c0_i32 = arith.constant 0 : i32
    %c0_i32_0 = arith.constant 0 : i32
    %c0_i32_1 = arith.constant 0 : i32
    return %c0_i32, %c0_i32_0 : i32, i32
  }
  func.func @transform_4(%arg0: i32) -> (i32, i32) {
    %c0_i32 = arith.constant 0 : i32
    %c0_i32_0 = arith.constant 0 : i32
    %c0_i32_1 = arith.constant 0 : i32
    return %c0_i32, %c0_i32_0 : i32, i32
  }
  func.func @transform_5(%arg0: i32) -> (i32, i32) {
    %c0_i32 = arith.constant 0 : i32
    %c0_i32_0 = arith.constant 0 : i32
    %c0_i32_1 = arith.constant 0 : i32
    return %c0_i32, %c0_i32_0 : i32, i32
  }
  func.func @transform_6(%arg0: i32) -> (i32, i32) {
    %c0_i32 = arith.constant 0 : i32
    %c0_i32_0 = arith.constant 0 : i32
    %c0_i32_1 = arith.constant 0 : i32
    return %c0_i32, %c0_i32_0 : i32, i32
  }
  func.func @transform_7(%arg0: i32) -> (i32, i32) {
    %c0_i32 = arith.constant 0 : i32
    %c0_i32_0 = arith.constant 0 : i32
    %c0_i32_1 = arith.constant 0 : i32
    return %c0_i32, %c0_i32_0 : i32, i32
  }
  func.func @transform_8(%arg0: i32) -> (i32, i32) {
    %c0_i32 = arith.constant 0 : i32
    %c0_i32_0 = arith.constant 0 : i32
    %c0_i32_1 = arith.constant 0 : i32
    return %c0_i32, %c0_i32_0 : i32, i32
  }
  func.func @transform_9(%arg0: i32) -> (i32, i32) {
    %c0_i32 = arith.constant 0 : i32
    %c0_i32_0 = arith.constant 0 : i32
    %c0_i32_1 = arith.constant 0 : i32
    return %c0_i32, %c0_i32_0 : i32, i32
  }
}

</mosaic_0001>

<bundles_post_ra>
// kernel: tpu_custom_call.1
= control target key start
LH: loop header
LB: loop body
LE: loop exit
PB: predicated region body
PF: predicated region fallthrough
CT: control target
= control target key end

     0   :  { %14 = vsyncpa [#allocation3], 0  ;;  %s1736_s0 = inlined_call_operand.hbm [shape: f32[4,512], index: 0, kind: input, shape index: {}]   ;;  %s1737_s1 = inlined_call_operand.vmem [shape: bf16[16,36], index: 1, kind: input, shape index: {}]   ;;  %s1738_s2 = inlined_call_operand.hbm [shape: bf16[8,72], index: 2, kind: input, shape index: {}]   ;;  %s1739_s3 = inlined_call_operand.vmem [shape: f32[8,1], index: 3, kind: input, shape index: {}]   ;;  %s1740_s4 = inlined_call_operand.vmem [shape: f32[8,1], index: 4, kind: input, shape index: {}]   ;;  %s1741_s5 = inlined_call_operand.vmem [shape: f32[8,1], index: 5, kind: input, shape index: {}]   ;;  %s1742_s6 = inlined_call_operand.vmem [shape: f32[8,1], index: 6, kind: input, shape index: {}]   ;;  %s1743_s7 = inlined_call_operand.vmem [shape: f32[8,1], index: 7, kind: input, shape index: {}]   ;;  %s1744_s8 = inlined_call_operand.vmem [shape: f32[9,512], index: 8, kind: input, shape index: {}]   ;;  %s1745_s9 = inlined_call_operand.hbm [shape: f32[8,512], index: 9, kind: output, shape index: {}]  }
   0x1   :  { %15 = vsyncpa [#allocation6], 0 }
   0x2   :  { %16 = vsyncpa [#allocation4], 0  ;;  %s1058_s30 = smov [#allocation2]   ;;  %s1059_s11 = smov [#allocation5]  }
   0x3   :  { %s23_s10 = sshll.u32 %s1058_s30, 4  ;;  %s35_s12 = sshll.u32 %s1059_s11, 4  ;;  %s24_s10 = int_to_ptr.vmem [resolvable:$true] %s23_s10  ;;  %s36_s12 = int_to_ptr.vmem [resolvable:$true] %s35_s12 }
   0x4   :  { %s986_s15 = scalar_lea.hbm %s1736_s0, 256 }
   0x5   :  { %p987_p0 = scmp.ne.s32.totalorder %s1736_s0, %s986_s15  ;;  %p990_p1 = scmp.lt.u32.totalorder %s986_s15, %s1736_s0 }
   0x7   :  { %p992_p2 = pnand %p990_p1, %p987_p0 }
   0x9   :  { %995 = shalt.err (!%p992_p2)
}
   0xa   :  { %s996_s20 = scalar_lea.vmem %s24_s10, 256  ;;  %p1001_p4 = scmp.lt.s32.totalorder %s24_s10, %s24_s10 }
   0xb   :  { %p997_p3 = scmp.ne.s32.totalorder %s24_s10, %s996_s20  ;;  %p1002_p5 = scmp.lt.s32.totalorder %s996_s20, %s996_s20 }
   0xd   :  { %p1003_p6 = por %p1002_p5, %p1001_p4 }
   0xf   :  { %p1004_p7 = pnand %p1003_p6, %p997_p3 }
  0x11   :  { %1007 = shalt.err (!%p1004_p7)
}
  0x12   :  { %26 = dma.hbm_to_vmem [thread:$0]  %s1736_s0, 256, %s24_s10, [#allocation3]  }
  0x13   :  { %s1008_s25 = scalar_lea.hbm %s1738_s2, 64 }
  0x14   :  { %p1009_p8 = scmp.ne.s32.totalorder %s1738_s2, %s1008_s25  ;;  %p1012_p9 = scmp.lt.u32.totalorder %s1008_s25, %s1738_s2 }
  0x16   :  { %p1014_p10 = pnand %p1012_p9, %p1009_p8 }
  0x18   :  { %1017 = shalt.err (!%p1014_p10)
}
  0x19   :  { %s1018_s30 = scalar_lea.vmem %s36_s12, 64  ;;  %p1023_p12 = scmp.lt.s32.totalorder %s36_s12, %s36_s12 }
  0x1a   :  { %p1019_p11 = scmp.ne.s32.totalorder %s36_s12, %s1018_s30  ;;  %p1024_p13 = scmp.lt.s32.totalorder %s1018_s30, %s1018_s30 }
  0x1c   :  { %p1025_p0 = por %p1024_p13, %p1023_p12 }
  0x1e   :  { %p1026_p1 = pnand %p1025_p0, %p1019_p11 }
  0x20   :  { %1029 = shalt.err (!%p1026_p1)
}
  0x21   :  { %38 = dma.hbm_to_vmem [thread:$0]  %s1738_s2, 64, %s36_s12, [#allocation6]  }
  0x22   :  { %1052 = dma.done.wait [#allocation3], 256  }
  0x23   :  { %1053 = vsyncadd [#allocation3], 4294967040 }
  0x24   :  { %1054 = dma.done.wait [#allocation6], 64  }
  0x25   :  { %1055 = vsyncadd [#allocation6], 4294967232  ;;  %v1144_v0 = vld [vmem:[#allocation2] sm:$0xff]  ;;  %s1060_s11 = smov 1   ;;  %s1061_s13 = smov 16   ;;  %v1154_v2 = vld [vmem:[#allocation2 + $0x8] sm:$0xff]  ;;  %v91_v5 = vlaneseq }
  0x26   :  { %199 = vrot.lane.b32.xlu1 %v1144_v0, %s1060_s11  ;;  %123 = vrot.lane.b32.xlu0 %v1144_v0, %s1061_s13  ;;  %v1152_v1 = vcombine.high %v1144_v0, %v1144_v0  ;;  %v1162_v3 = vcombine.high %v1154_v2, %v1154_v2  ;;  %s1062_s2 = smov 17   ;;  %s1063_s12 = smov 15   ;;  %v1067_v4 = vmov 0   ;;  %v951_v13 = vld [vmem:[%s1744_s8 + $0x3] ss:$8 sm:$0xf] }
  0x27   :  { %s1064_s14 = smov 127   ;;  %s1065_s15 = smov 112   ;;  %520 = vmatprep.mubr.bf16.mxu0 %v1067_v4  ;;  %563 = vmatprep.mubr.bf16.mxu1 %v1067_v4  ;;  %v100_v8 = vshrl.u32 %v91_v5, 7  ;;  %v1224_v9 = vand.u32 127, %v91_v5  ;;  %vm437_vm4 = vcmask 1043456   ;;  %vm475_vm9 = vcmask 1041408  }
  0x28   :  { %s1066_s16 = smov 113   ;;  %977 = vset.pattern.permute.xlu0 %v1067_v4  ;;  %978 = vset.pattern.permute.xlu1 %v1067_v4  ;;  %s1068_s17 = smov 111   ;;  %v949_v14 = vld [vmem:[%s1744_s8 + $0x1] ss:$8 sm:$0xf]  ;;  %vm471_vm10 = vcmask 293888  }
  0x29   :  { %v1228_v12 = vsub.s32 1, %v100_v8  ;;  %vm207_vm0 = vcmp.lt.s32.totalorder %v1224_v9, 1  ;;  %vm131_vm1 = vcmp.lt.s32.totalorder %v1224_v9, 16  ;;  %v1241_v17 = vld [vmem:[%s1744_s8] ss:$8 sm:$0xf] }
  0x2a   :  { %201 = vrot.lane.b32.xlu1 %v1152_v1, %s1060_s11  ;;  %125 = vrot.lane.b32.xlu0 %v1152_v1, %s1061_s13  ;;  %vm93_vm2 = vcmp.lt.s32.totalorder %v1224_v9, 17  ;;  %v1258_v22 = vld [vmem:[%s1744_s8 + $0x2] ss:$8 sm:$0xf]  ;;  %v1266_v26 = vsub.s32 0, %v100_v8  ;;  %vm169_vm3 = vcmp.lt.s32.totalorder %v1224_v9, 15 }
  0x2b   :  { %v1244_v18 = vrot.slane %v951_v13, %v1228_v12  ;;  %v1247_v19 = vrot.slane %v949_v14, %v1228_v12  ;;  %v1264_v24 = vrot.slane %v1241_v17, %v1228_v12  ;;  %v1276_v30 = vrot.slane %v1258_v22, %v1228_v12 }
  0x2c   :  { %v1282_v34 = vrot.slane %v951_v13, %v1266_v26  ;;  %v1288_v38 = vrot.slane %v949_v14, %v1266_v26  ;;  %v1297_v43 = vrot.slane %v1241_v17, %v1266_v26  ;;  %v1307_v51 = vrot.slane %v1258_v22, %v1266_v26 }
  0x2d   :  { %v1309_v52 = vsub.s32 2, %v100_v8  ;;  %v1311_v53 = vsub.s32 3, %v100_v8  ;;  %vm245_vm5 = vcmp.lt.s32.totalorder %v1224_v9, 127  ;;  %vm321_vm6 = vcmp.lt.s32.totalorder %v1224_v9, 112 }
  0x2e   :  { %205 = vrot.lane.b32.xlu1 %v1162_v3, %s1060_s11  ;;  %129 = vrot.lane.b32.xlu0 %v1162_v3, %s1061_s13  ;;  %vm283_vm7 = vcmp.lt.s32.totalorder %v1224_v9, 113  ;;  %vm359_vm8 = vcmp.lt.s32.totalorder %v1224_v9, 111  ;;  %vm780_vm11 = vcmask 588800  }
  0x2f   :  { %v1318_v61 = vrot.slane %v949_v14, %v1309_v52  ;;  %v1321_v62 = vrot.slane %v949_v14, %v1311_v53  ;;  %v1324_v63 = vrot.slane %v951_v13, %v1309_v52 }
  0x32   :  { %85 = vrot.lane.b32.xlu1 %v1152_v1, %s1062_s2  ;;  %83 = vrot.lane.b32.xlu0 %v1144_v0, %s1062_s2 }
  0x36   :  { %163 = vrot.lane.b32.xlu1 %v1152_v1, %s1063_s12  ;;  %161 = vrot.lane.b32.xlu0 %v1144_v0, %s1063_s12 }
  0x3a   :  { %127 = vrot.lane.b32.xlu1 %v1154_v2, %s1061_s13  ;;  %89 = vrot.lane.b32.xlu0 %v1162_v3, %s1062_s2 }
  0x3e   :  { %203 = vrot.lane.b32.xlu1 %v1154_v2, %s1060_s11  ;;  %167 = vrot.lane.b32.xlu0 %v1162_v3, %s1063_s12 }
  0x42   :  { %241 = vrot.lane.b32.xlu1 %v1154_v2, %s1064_s14  ;;  %239 = vrot.lane.b32.xlu0 %v1152_v1, %s1064_s14 }
  0x46   :  { %317 = vrot.lane.b32.xlu1 %v1154_v2, %s1065_s15  ;;  %315 = vrot.lane.b32.xlu0 %v1152_v1, %s1065_s15 }
  0x4a   :  { %165 = vrot.lane.b32.xlu1 %v1154_v2, %s1063_s12  ;;  %87 = vrot.lane.b32.xlu0 %v1154_v2, %s1062_s2 }
  0x4e   :  { %313 = vrot.lane.b32.xlu1 %v1144_v0, %s1065_s15  ;;  %237 = vrot.lane.b32.xlu0 %v1144_v0, %s1064_s14 }
  0x52   :  { %279 = vrot.lane.b32.xlu1 %v1154_v2, %s1066_s16  ;;  %277 = vrot.lane.b32.xlu0 %v1152_v1, %s1066_s16 }
  0x56   :  { %275 = vrot.lane.b32.xlu1 %v1144_v0, %s1066_s16  ;;  %243 = vrot.lane.b32.xlu0 %v1162_v3, %s1064_s14 }
  0x5a   :  { %281 = vrot.lane.b32.xlu1 %v1162_v3, %s1066_s16  ;;  %319 = vrot.lane.b32.xlu0 %v1162_v3, %s1065_s15 }
  0x5e   :  { %353 = vrot.lane.b32.xlu1 %v1152_v1, %s1068_s17  ;;  %351 = vrot.lane.b32.xlu0 %v1144_v0, %s1068_s17 }
  0x62   :  { %357 = vrot.lane.b32.xlu1 %v1162_v3, %s1068_s17  ;;  %355 = vrot.lane.b32.xlu0 %v1154_v2, %s1068_s17 }
  0x98   :  { %v200_v6 = vpop.permute.xlu1 %199  ;;  %v124_v7 = vpop.permute.xlu0 %123 }
  0x9c   :  { %v1226_v10 = vpop.permute.xlu1 %201  ;;  %v126_v11 = vpop.permute.xlu0 %125 }
  0x9d   :  { %v210_v20 = vsel %vm207_vm0, %v200_v6, %v1226_v10  ;;  %v134_v21 = vsel %vm131_vm1, %v124_v7, %v126_v11 }
  0x9e   :  { %v234_v28 = vmul.f32 %v1244_v18, %v210_v20  ;;  %v158_v29 = vmul.f32 %v1247_v19, %v134_v21 }
  0xa0   :  { %v206_v15 = vpop.permute.xlu1 %205  ;;  %v130_v16 = vpop.permute.xlu0 %129  ;;  %v406_v36 = vrot.slane %v234_v28, 4  ;;  %v394_v37 = vrot.slane %v158_v29, 4 }
  0xa1   :  { %v211_v40 = vsel %vm207_vm0, %v206_v15, %v200_v6  ;;  %v135_v41 = vsel %vm131_vm1, %v130_v16, %v124_v7  ;;  %v1329_v6 = vrot.slane %v951_v13, %v1311_v53 }
  0xa2   :  { %v233_v49 = vmul.f32 %v1282_v34, %v211_v40  ;;  %v157_v50 = vmul.f32 %v1288_v38, %v135_v41 }
  0xa4   :  { %v1260_v23 = vpop.permute.xlu1 %85  ;;  %v84_v25 = vpop.permute.xlu0 %83  ;;  %v405_v58 = vrot.slane %v233_v49, 4  ;;  %v393_v59 = vrot.slane %v157_v50, 4 }
  0xa5   :  { %v96_v27 = vsel %vm93_vm2, %v84_v25, %v1260_v23 }
  0xa6   :  { %v120_v31 = vmul.f32 %v1264_v24, %v96_v27 }
  0xa8   :  { %v1279_v32 = vpop.permute.xlu1 %163  ;;  %v162_v33 = vpop.permute.xlu0 %161  ;;  %v439_v45 = vsel %vm437_vm4, %v120_v31, %v394_v37  ;;  %v1367_v37 = vrot.slane %v1241_v17, %v1309_v52 }
  0xa9   :  { %v172_v35 = vsel %vm169_vm3, %v162_v33, %v1279_v32 }
  0xaa   :  { %v196_v39 = vmul.f32 %v1276_v30, %v172_v35  ;;  %v1359_v35 = vrot.slane %v1258_v22, %v1309_v52 }
  0xac   :  { %v128_v42 = vpop.permute.xlu1 %127  ;;  %v90_v44 = vpop.permute.xlu0 %89  ;;  %v443_v46 = vsel %vm437_vm4, %v196_v39, %v406_v36  ;;  %v1363_v36 = vrot.slane %v1258_v22, %v1311_v53  ;;  %v1371_v39 = vrot.slane %v1241_v17, %v1311_v53 }
  0xad   :  { %v97_v47 = vsel %vm93_vm2, %v90_v44, %v84_v25  ;;  %v455_v48 = vpack.c.bf16 %v443_v46, %v439_v45  ;;  %v133_v5 = vsel %vm131_vm1, %v126_v11, %v128_v42  ;;  %v132_v14 = vsel %vm131_vm1, %v128_v42, %v130_v16  ;;  %v952_v16 = vld [vmem:[%s1744_s8 + $0x5] ss:$8 sm:$0xf] }
  0xae   :  { %v119_v54 = vmul.f32 %v1297_v43, %v97_v47  ;;  %v159_v13 = vmul.f32 %v1318_v61, %v133_v5  ;;  %v160_v28 = vmul.f32 %v1321_v62, %v132_v14  ;;  %v1374_v41 = vrot.slane %v952_v16, %v1228_v12 }
  0xaf   :  { %488 = vmatprep.subr.bf16.mxu0 %v455_v48 }
  0xb0   :  { %v204_v55 = vpop.permute.xlu1 %203  ;;  %v168_v56 = vpop.permute.xlu0 %167  ;;  %v438_v20 = vsel %vm437_vm4, %v119_v54, %v393_v59  ;;  %v395_v40 = vrot.slane %v159_v13, 4  ;;  %v396_v22 = vrot.slane %v160_v28, 4 }
  0xb1   :  { %v173_v57 = vsel %vm169_vm3, %v168_v56, %v162_v33  ;;  %v208_v25 = vsel %vm207_vm0, %v204_v55, %v206_v15  ;;  %v209_v11 = vsel %vm207_vm0, %v1226_v10, %v204_v55  ;;  %v1354_v10 = vld [vmem:[%s1744_s8 + $0x7] ss:$8 sm:$0xf] }
  0xb2   :  { %v195_v60 = vmul.f32 %v1307_v51, %v173_v57  ;;  %v235_v29 = vmul.f32 %v1324_v63, %v209_v11  ;;  %v236_v31 = vmul.f32 %v1329_v6, %v208_v25  ;;  %v1379_v42 = vrot.slane %v1354_v10, %v1228_v12 }
  0xb4   :  { %v1331_v7 = vpop.permute.xlu1 %241  ;;  %v240_v8 = vpop.permute.xlu0 %239  ;;  %v442_v21 = vsel %vm437_vm4, %v195_v60, %v405_v58  ;;  %v407_v45 = vrot.slane %v235_v29, 4  ;;  %v408_v46 = vrot.slane %v236_v31, 4  ;;  %v1417_v31 = vrot.slane %v952_v16, %v1266_v26 }
  0xb5   :  { %v454_v27 = vpack.c.bf16 %v442_v21, %v438_v20  ;;  %v247_v47 = vsel %vm245_vm5, %v240_v8, %v1331_v7 }
  0xb7   :  { %489 = vmatpush1.bf16.msra.mxu0 %v454_v27 }
  0xb8   :  { %v1349_v33 = vpop.permute.xlu1 %317  ;;  %v316_v15 = vpop.permute.xlu0 %315 }
  0xbc   :  { %v166_v48 = vpop.permute.xlu1 %165  ;;  %v88_v17 = vpop.permute.xlu0 %87 }
  0xbd   :  { %v170_v49 = vsel %vm169_vm3, %v166_v48, %v168_v56  ;;  %v171_v50 = vsel %vm169_vm3, %v1279_v32, %v166_v48  ;;  %v94_v54 = vsel %vm93_vm2, %v88_v17, %v90_v44  ;;  %v95_v55 = vsel %vm93_vm2, %v1260_v23, %v88_v17  ;;  %v953_v23 = vld [vmem:[%s1744_s8 + $0x6] ss:$8 sm:$0xf] }
  0xbe   :  { %v197_v57 = vmul.f32 %v1359_v35, %v171_v50  ;;  %v198_v58 = vmul.f32 %v1363_v36, %v170_v49  ;;  %v121_v59 = vmul.f32 %v1367_v37, %v95_v55  ;;  %v122_v60 = vmul.f32 %v1371_v39, %v94_v54 }
  0xbf   :  { %v272_v56 = vmul.f32 %v1374_v41, %v247_v47  ;;  %v323_v32 = vsel %vm321_vm6, %v316_v15, %v1349_v33  ;;  %v1404_v44 = vrot.slane %v1354_v10, %v1266_v26  ;;  %v1429_v17 = vrot.slane %v953_v23, %v1266_v26 }
  0xc0   :  { %v314_v5 = vpop.permute.xlu1 %313  ;;  %v238_v20 = vpop.permute.xlu0 %237  ;;  %v441_v21 = vsel %vm437_vm4, %v122_v60, %v396_v22  ;;  %v445_v14 = vsel %vm437_vm4, %v198_v58, %v408_v46  ;;  %v440_v25 = vsel %vm437_vm4, %v121_v59, %v395_v40  ;;  %v444_v11 = vsel %vm437_vm4, %v197_v57, %v407_v45 }
  0xc1   :  { %v324_v27 = vsel %vm321_vm6, %v314_v5, %v316_v15  ;;  %v457_v13 = vpack.c.bf16 %v445_v14, %v441_v21  ;;  %v456_v28 = vpack.c.bf16 %v444_v11, %v440_v25  ;;  %v348_v29 = vmul.f32 %v1379_v42, %v323_v32 }
  0xc2   :  { %v1421_v22 = vrot.slane %v953_v23, %v1228_v12  ;;  %v248_v40 = vsel %vm245_vm5, %v238_v20, %v240_v8  ;;  %v418_v45 = vrot.slane %v272_v56, 4  ;;  %v347_v46 = vmul.f32 %v1404_v44, %v324_v27 }
  0xc3   :  { %531 = vmatprep.subr.bf16.mxu1 %v457_v13  ;;  %v1432_v49 = vrot.slane %v952_v16, %v1309_v52  ;;  %v430_v50 = vrot.slane %v348_v29, 4  ;;  %v271_v54 = vmul.f32 %v1417_v31, %v248_v40  ;;  %v1437_v55 = vrot.slane %v952_v16, %v1311_v53 }
  0xc4   :  { %v280_v15 = vpop.permute.xlu1 %279  ;;  %532 = vmatpush1.bf16.msra.mxu1 %v456_v28  ;;  %v278_v47 = vpop.permute.xlu0 %277  ;;  %v1441_v57 = vrot.slane %v1354_v10, %v1309_v52  ;;  %v429_v58 = vrot.slane %v347_v46, 4  ;;  %v447_v56 = vsel %vm437_vm4, %v1152_v1, %v418_v45  ;;  %v1448_v21 = vrot.slane %v1354_v10, %v1311_v53  ;;  %v955_v1 = vld [vmem:[%s1744_s8 + $0x20] ss:$8 sm:$0xf] }
  0xc5   :  { %v285_v48 = vsel %vm283_vm7, %v278_v47, %v280_v15  ;;  %v417_v27 = vrot.slane %v271_v54, 4  ;;  %v1464_v29 = vrot.slane %v953_v23, %v1309_v52 }
  0xc6   :  { %v310_v8 = vmul.f32 %v1421_v22, %v285_v48 }
  0xc8   :  { %v276_v59 = vpop.permute.xlu1 %275  ;;  %v244_v60 = vpop.permute.xlu0 %243  ;;  %v451_v32 = vsel %vm437_vm4, %v310_v8, %v430_v50 }
  0xc9   :  { %v286_v16 = vsel %vm283_vm7, %v276_v59, %v278_v47  ;;  %v246_v14 = vsel %vm245_vm5, %v1331_v7, %v244_v60  ;;  %v249_v25 = vsel %vm245_vm5, %v244_v60, %v238_v20  ;;  %v459_v11 = vpack.c.bf16 %v451_v32, %v447_v56 }
  0xca   :  { %v309_v13 = vmul.f32 %v1429_v17, %v286_v16  ;;  %v273_v10 = vmul.f32 %v1432_v49, %v246_v14  ;;  %v274_v28 = vmul.f32 %v1437_v55, %v249_v25  ;;  %v1467_v7 = vrot.slane %v953_v23, %v1311_v53 }
  0xcb   :  { %490 = vmatprep.subr.bf16.mxu0 %v459_v11  ;;  %v1472_v47 = vrot.slane %v955_v1, %v1266_v26  ;;  %v446_v26 = vsel %vm437_vm4, %v1144_v0, %v417_v27  ;;  %v1495_v11 = vrot.slane %v955_v1, %v1228_v12  ;;  %v1498_v0 = vrot.slane %v955_v1, %v1309_v52 }
  0xcc   :  { %v420_v20 = vrot.slane %v274_v28, 4  ;;  %v282_v40 = vpop.permute.xlu1 %281  ;;  %v320_v45 = vpop.permute.xlu0 %319  ;;  %v450_v46 = vsel %vm437_vm4, %v309_v13, %v429_v58  ;;  %v419_v8 = vrot.slane %v273_v10, 4 }
  0xcd   :  { %v284_v48 = vsel %vm283_vm7, %v280_v15, %v282_v40  ;;  %v287_v50 = vsel %vm283_vm7, %v282_v40, %v276_v59  ;;  %v322_v23 = vsel %vm321_vm6, %v1349_v33, %v320_v45  ;;  %v325_v54 = vsel %vm321_vm6, %v320_v45, %v314_v5 }
  0xce   :  { %v349_v58 = vmul.f32 %v1441_v57, %v322_v23  ;;  %v350_v60 = vmul.f32 %v1448_v21, %v325_v54  ;;  %v458_v56 = vpack.c.bf16 %v450_v46, %v446_v26  ;;  %v1488_v15 = vrot.slane %v955_v1, %v1311_v53  ;;  %v981_v26 = vld [vmem:[%s1737_s1] sm:$0xff]  }
  0xcf   :  { %v311_v59 = vmul.f32 %v1464_v29, %v284_v48  ;;  %v312_v32 = vmul.f32 %v1467_v7, %v287_v50  ;;  %v449_v53 = vsel %vm437_vm4, %v1162_v3, %v420_v20  ;;  %v448_v10 = vsel %vm437_vm4, %v1154_v2, %v419_v8 }
  0xd0   :  { %v431_v33 = vrot.slane %v349_v58, 4  ;;  %v432_v16 = vrot.slane %v350_v60, 4  ;;  %v354_v14 = vpop.permute.xlu1 %353  ;;  %v352_v5 = vpop.permute.xlu0 %351  ;;  %491 = vmatpush1.bf16.msra.mxu0 %v458_v56 }
  0xd1   :  { %v362_v25 = vsel %vm359_vm8, %v352_v5, %v354_v14 }
  0xd2   :  { %v385_v27 = vmul.f32 %v1472_v47, %v362_v25  ;;  %v453_v13 = vsel %vm437_vm4, %v312_v32, %v432_v16  ;;  %v452_v28 = vsel %vm437_vm4, %v311_v59, %v431_v33 }
  0xd3   :  { %v461_v40 = vpack.c.bf16 %v453_v13, %v449_v53  ;;  %v460_v45 = vpack.c.bf16 %v452_v28, %v448_v10 }
  0xd4   :  { %v358_v46 = vpop.permute.xlu1 %357  ;;  %v356_v12 = vpop.permute.xlu0 %355  ;;  %v462_v20 = vpack.c.bf16 %v385_v27, %v385_v27 }
  0xd5   :  { %v363_v52 = vsel %vm359_vm8, %v358_v46, %v352_v5  ;;  %v360_v1 = vsel %vm359_vm8, %v356_v12, %v358_v46  ;;  %v361_v3 = vsel %vm359_vm8, %v354_v14, %v356_v12  ;;  %533 = vmatprep.subr.bf16.mxu1 %v461_v40 }
  0xd6   :  { %v388_v48 = vmul.f32 %v1488_v15, %v363_v52  ;;  %v386_v2 = vmul.f32 %v1495_v11, %v361_v3  ;;  %v387_v50 = vmul.f32 %v1498_v0, %v360_v1  ;;  %534 = vmatpush1.bf16.msra.mxu1 %v460_v45  ;;  %v477_v58 = vsel %vm475_vm9, %v462_v20, 0 }
  0xd8   :  { %v465_v23 = vpack.c.bf16 %v388_v48, %v388_v48  ;;  %v463_v54 = vpack.c.bf16 %v386_v2, %v386_v2  ;;  %v464_v8 = vpack.c.bf16 %v387_v50, %v387_v50 }
  0xda   :  { %957 = vmatprep.subr.msk.bf16.mxu0 %vm475_vm9, %v463_v54  ;;  %959 = vmatprep.subr.msk.bf16.mxu1 %vm475_vm9, %v465_v23  ;;  %v483_v60 = vsel %vm475_vm9, %v464_v8, 0  ;;  %v584_v23 = vld [vmem:[%s1740_s4] sm:$0xff] }
  0xdb   :  { %493 = vmatpush1.bf16.msra.mxu0 %v477_v58  ;;  %536 = vmatpush1.bf16.msra.mxu1 %v483_v60  ;;  %v585_v58 = vld [vmem:[%s1741_s5] sm:$0xff] }
  0xde   :  { %958 = vmatmul.mubr.msk.bf16.vlgmr.msra.gmra.mrb[0].mxu0 %vm471_vm10, %v981_v26  ;;  %960 = vmatmul.mubr.msk.bf16.vlgmr.msra.gmra.mrb[0].mxu1 %vm471_vm10, %v981_v26 }
  0xdf   :  { %828 = vmatprep.mubr.bf16.mxu0 %v1067_v4  ;;  %869 = vmatprep.mubr.bf16.mxu1 %v1067_v4 }
 0x1b1   :  { %v522_v56 = vpop.f32.mrb[0].mxu0  ;;  %v565_v59 = vpop.f32.mrb[0].mxu1 }
 0x1b2   :  { %v591_v32 = vmul.f32 %v522_v56, %v522_v56  ;;  %v524_v33 = vpop.f32.mrb[1].mxu0  ;;  %v567_v16 = vpop.f32.mrb[1].mxu1  ;;  %v593_v14 = vmul.f32 %v565_v59, %v565_v59 }
 0x1b3   :  { %v586_v5 = vadd.f32 %v524_v33, %v522_v56  ;;  %v592_v25 = vmul.f32 %v524_v33, %v524_v33  ;;  %v1521_v53 = vpop.f32.mrb[2].mxu0  ;;  %v1523_v27 = vpop.f32.mrb[2].mxu1  ;;  %v594_v4 = vmul.f32 %v567_v16, %v567_v16 }
 0x1b4   :  { %v1525_v13 = vpop.f32.mrb[3].mxu0  ;;  %v1527_v10 = vpop.f32.mrb[3].mxu1 }
 0x1b5   :  { %v587_v28 = vadd.f32 %v586_v5, %v565_v59  ;;  %v595_v40 = vadd.f32 %v592_v25, %v591_v32 }
 0x1b7   :  { %v588_v45 = vadd.f32 %v587_v28, %v567_v16  ;;  %v596_v46 = vadd.f32 %v595_v40, %v593_v14 }
 0x1b9   :  { %589 = vadd.xlane.f32.xlu0 %v588_v45  ;;  %v597_v12 = vadd.f32 %v596_v46, %v594_v4 }
 0x1bb   :  { %598 = vadd.xlane.f32.xlu1 %v597_v12 }
 0x246   :  { %v590_v52 = vpop.xlane.xlu0 %589 }
 0x247   :  { %v600_v1 = vmul.f32 0.001953125, %v590_v52 }
 0x248   :  { %v599_v3 = vpop.xlane.xlu1 %598 }
 0x249   :  { %v602_v20 = vmul.f32 %v600_v1, %v600_v1  ;;  %v601_v48 = vmul.f32 0.001953125, %v599_v3 }
 0x24b   :  { %v603_v2 = vsub.f32 %v601_v48, %v602_v20 }
 0x24d   :  { %v604_v50 = vadd.f32 1e-05, %v603_v2 }
 0x24f   :  { %982 = vrsqrt.f32 %v604_v50 }
 0x259   :  { %v983_v54 = vpop.eup %982 }
 0x25a   :  { %v606_v8 = vmul.f32 %v983_v54, %v584_v23 }
 0x25c   :  { %611 = vperm.xlu0 %977, %v606_v8   ;;  %v607_v60 = vmul.f32 %v606_v8, %v600_v1 }
 0x25e   :  { %v608_v26 = vsub.f32 %v585_v58, %v607_v60 }
 0x260   :  { %620 = vperm.xlu1 %978, %v608_v26  }
 0x2db   :  { %v612_v32 = vpop.permute.xlu0 %611 }
 0x2dc   :  { %v614_v14 = vmul.f32 %v612_v32, %v522_v56  ;;  %v616_v5 = vmul.f32 %v612_v32, %v565_v59  ;;  %v615_v28 = vmul.f32 %v612_v32, %v524_v33  ;;  %v617_v1 = vmul.f32 %v612_v32, %v567_v16 }
 0x2df   :  { %v621_v25 = vpop.permute.xlu1 %620 }
 0x2e0   :  { %v623_v40 = vadd.f32 %v621_v25, %v614_v14  ;;  %v625_v45 = vadd.f32 %v621_v25, %v616_v5  ;;  %v624_v4 = vadd.f32 %v621_v25, %v615_v28  ;;  %v626_v56 = vadd.f32 %v621_v25, %v617_v1 }
 0x2e2   :  { %v1535_v46 = vmax.f32 %v623_v40, 0.0  ;;  %v1537_v12 = vmax.f32 %v625_v45, 0.0  ;;  %v1543_v52 = vmax.f32 %v624_v4, 0.0  ;;  %v1553_v59 = vmax.f32 %v626_v56, 0.0 }
 0x2e4   :  { %636 = vrot.lane.b32.xlu0 %v1537_v12, %s1062_s2  ;;  %632 = vrot.lane.b32.xlu1 %v1535_v46, %s1062_s2 }
 0x2e8   :  { %664 = vrot.lane.b32.xlu0 %v1535_v46, %s1063_s12  ;;  %634 = vrot.lane.b32.xlu1 %v1543_v52, %s1062_s2 }
 0x2ec   :  { %680 = vrot.lane.b32.xlu0 %v1535_v46, %s1060_s11  ;;  %648 = vrot.lane.b32.xlu1 %v1535_v46, %s1061_s13 }
 0x2f0   :  { %670 = vrot.lane.b32.xlu0 %v1553_v59, %s1063_s12  ;;  %650 = vrot.lane.b32.xlu1 %v1543_v52, %s1061_s13 }
 0x2f4   :  { %668 = vrot.lane.b32.xlu0 %v1537_v12, %s1063_s12  ;;  %638 = vrot.lane.b32.xlu1 %v1553_v59, %s1062_s2 }
 0x2f8   :  { %698 = vrot.lane.b32.xlu0 %v1543_v52, %s1064_s14  ;;  %654 = vrot.lane.b32.xlu1 %v1553_v59, %s1061_s13 }
 0x2fc   :  { %696 = vrot.lane.b32.xlu0 %v1535_v46, %s1064_s14  ;;  %652 = vrot.lane.b32.xlu1 %v1537_v12, %s1061_s13 }
 0x300   :  { %714 = vrot.lane.b32.xlu0 %v1543_v52, %s1066_s16  ;;  %666 = vrot.lane.b32.xlu1 %v1543_v52, %s1063_s12 }
 0x304   :  { %730 = vrot.lane.b32.xlu0 %v1543_v52, %s1065_s15  ;;  %682 = vrot.lane.b32.xlu1 %v1543_v52, %s1060_s11 }
 0x308   :  { %712 = vrot.lane.b32.xlu0 %v1535_v46, %s1066_s16  ;;  %686 = vrot.lane.b32.xlu1 %v1553_v59, %s1060_s11 }
 0x30c   :  { %718 = vrot.lane.b32.xlu0 %v1553_v59, %s1066_s16  ;;  %684 = vrot.lane.b32.xlu1 %v1537_v12, %s1060_s11 }
 0x310   :  { %744 = vrot.lane.b32.xlu0 %v1535_v46, %s1068_s17  ;;  %700 = vrot.lane.b32.xlu1 %v1537_v12, %s1064_s14 }
 0x314   :  { %748 = vrot.lane.b32.xlu0 %v1537_v12, %s1068_s17  ;;  %702 = vrot.lane.b32.xlu1 %v1553_v59, %s1064_s14 }
 0x318   :  { %716 = vrot.lane.b32.xlu1 %v1537_v12, %s1066_s16 }
 0x31c   :  { %732 = vrot.lane.b32.xlu1 %v1537_v12, %s1065_s15 }
 0x320   :  { %728 = vrot.lane.b32.xlu1 %v1535_v46, %s1065_s15 }
 0x324   :  { %734 = vrot.lane.b32.xlu1 %v1553_v59, %s1065_s15 }
 0x328   :  { %746 = vrot.lane.b32.xlu1 %v1543_v52, %s1068_s17 }
 0x32c   :  { %750 = vrot.lane.b32.xlu1 %v1553_v59, %s1068_s17 }
 0x356   :  { %v637_v33 = vpop.permute.xlu0 %636  ;;  %v633_v16 = vpop.permute.xlu1 %632 }
 0x35a   :  { %v665_v3 = vpop.permute.xlu0 %664  ;;  %v635_v20 = vpop.permute.xlu1 %634 }
 0x35b   :  { %v642_v50 = vsel %vm93_vm2, %v633_v16, %v635_v20 }
 0x35c   :  { %v645_v8 = vmul.f32 %v642_v50, %v1264_v24  ;;  %v641_v24 = vsel %vm93_vm2, %v635_v20, %v637_v33 }
 0x35e   :  { %v681_v48 = vpop.permute.xlu0 %680  ;;  %v649_v2 = vpop.permute.xlu1 %648 }
 0x362   :  { %v651_v23 = vpop.permute.xlu1 %650  ;;  %v671_v58 = vpop.permute.xlu0 %670 }
 0x363   :  { %v658_v54 = vsel %vm131_vm1, %v649_v2, %v651_v23 }
 0x364   :  { %v661_v60 = vmul.f32 %v658_v54, %v1247_v19 }
 0x366   :  { %v639_v26 = vpop.permute.xlu1 %638  ;;  %v761_v32 = vpack.c.bf16 %v661_v60, %v645_v8  ;;  %v669_v5 = vpop.permute.xlu0 %668 }
 0x367   :  { %v643_v14 = vsel %vm93_vm2, %v639_v26, %v633_v16  ;;  %v640_v19 = vsel %vm93_vm2, %v637_v33, %v639_v26 }
 0x368   :  { %796 = vmatprep.subr.bf16.mxu0 %v761_v32  ;;  %v644_v40 = vmul.f32 %v643_v14, %v1297_v43  ;;  %v647_v43 = vmul.f32 %v640_v19, %v1371_v39 }
 0x36a   :  { %v655_v25 = vpop.permute.xlu1 %654  ;;  %v699_v50 = vpop.permute.xlu0 %698 }
 0x36b   :  { %v659_v28 = vsel %vm131_vm1, %v655_v25, %v649_v2  ;;  %v646_v2 = vmul.f32 %v641_v24, %v1367_v37 }
 0x36c   :  { %v660_v45 = vmul.f32 %v659_v28, %v1288_v38 }
 0x36e   :  { %v760_v4 = vpack.c.bf16 %v660_v45, %v644_v40  ;;  %v653_v1 = vpop.permute.xlu1 %652  ;;  %v697_v26 = vpop.permute.xlu0 %696  ;;  %v672_v40 = vsel %vm169_vm3, %v669_v5, %v671_v58 }
 0x36f   :  { %v656_v56 = vsel %vm131_vm1, %v653_v1, %v655_v25  ;;  %v657_v16 = vsel %vm131_vm1, %v651_v23, %v653_v1 }
 0x370   :  { %v662_v38 = vmul.f32 %v657_v16, %v1318_v61  ;;  %v663_v20 = vmul.f32 %v656_v56, %v1321_v62  ;;  %797 = vmatpush1.bf16.msra.mxu0 %v760_v4  ;;  %v675_v62 = vsel %vm169_vm3, %v671_v58, %v665_v3 }
 0x371   :  { %v676_v28 = vmul.f32 %v675_v62, %v1307_v51 }
 0x372   :  { %v762_v54 = vpack.c.bf16 %v662_v38, %v646_v2  ;;  %v667_v33 = vpop.permute.xlu1 %666  ;;  %v763_v8 = vpack.c.bf16 %v663_v20, %v647_v43  ;;  %v715_v45 = vpop.permute.xlu0 %714 }
 0x373   :  { %v674_v60 = vsel %vm169_vm3, %v665_v3, %v667_v33  ;;  %v679_v3 = vmul.f32 %v672_v40, %v1363_v36 }
 0x374   :  { %837 = vmatprep.subr.bf16.mxu1 %v763_v8  ;;  %v677_v39 = vmul.f32 %v674_v60, %v1276_v30 }
 0x375   :  { %838 = vmatpush1.bf16.msra.mxu1 %v762_v54 }
 0x376   :  { %v683_v23 = vpop.permute.xlu1 %682 }
 0x377   :  { %v690_v37 = vsel %vm207_vm0, %v681_v48, %v683_v23 }
 0x378   :  { %v693_v61 = vmul.f32 %v690_v37, %v1244_v18  ;;  %v673_v18 = vsel %vm169_vm3, %v667_v33, %v669_v5  ;;  %v731_v5 = vpop.permute.xlu0 %730 }
 0x379   :  { %v678_v58 = vmul.f32 %v673_v18, %v1359_v35 }
 0x37a   :  { %v687_v32 = vpop.permute.xlu1 %686  ;;  %v765_v14 = vpack.c.bf16 %v693_v61, %v677_v39 }
 0x37b   :  { %v691_v25 = vsel %vm207_vm0, %v687_v32, %v681_v48  ;;  %v706_v48 = vsel %vm245_vm5, %v697_v26, %v699_v50 }
 0x37c   :  { %v692_v24 = vmul.f32 %v691_v25, %v1282_v34  ;;  %798 = vmatprep.subr.bf16.mxu0 %v765_v14  ;;  %v708_v2 = vmul.f32 %v706_v48, %v1417_v31  ;;  %v713_v33 = vpop.permute.xlu0 %712 }
 0x37e   :  { %v764_v30 = vpack.c.bf16 %v692_v24, %v676_v28  ;;  %v685_v19 = vpop.permute.xlu1 %684 }
 0x37f   :  { %v688_v4 = vsel %vm207_vm0, %v685_v19, %v687_v32  ;;  %v689_v51 = vsel %vm207_vm0, %v683_v23, %v685_v19 }
 0x380   :  { %v694_v34 = vmul.f32 %v689_v51, %v1324_v63  ;;  %v695_v1 = vmul.f32 %v688_v4, %v1329_v6  ;;  %799 = vmatpush1.bf16.msra.mxu0 %v764_v30  ;;  %v768_v63 = vpack.c.bf16 %v708_v2, %v1535_v46  ;;  %v719_v60 = vpop.permute.xlu0 %718 }
 0x381   :  { %v723_v14 = vsel %vm283_vm7, %v719_v60, %v713_v33 }
 0x382   :  { %v766_v56 = vpack.c.bf16 %v694_v34, %v678_v58  ;;  %v701_v16 = vpop.permute.xlu1 %700  ;;  %v767_v36 = vpack.c.bf16 %v695_v1, %v679_v3 }
 0x383   :  { %v705_v43 = vsel %vm245_vm5, %v699_v50, %v701_v16 }
 0x384   :  { %v709_v38 = vmul.f32 %v705_v43, %v1374_v41  ;;  %839 = vmatprep.subr.bf16.mxu1 %v767_v36  ;;  %v745_v62 = vpop.permute.xlu0 %744 }
 0x385   :  { %840 = vmatpush1.bf16.msra.mxu1 %v766_v56 }
 0x386   :  { %v703_v20 = vpop.permute.xlu1 %702  ;;  %v769_v35 = vpack.c.bf16 %v709_v38, %v1543_v52 }
 0x387   :  { %v704_v6 = vsel %vm245_vm5, %v701_v16, %v703_v20  ;;  %v707_v54 = vsel %vm245_vm5, %v703_v20, %v697_v26 }
 0x388   :  { %v710_v31 = vmul.f32 %v704_v6, %v1432_v49  ;;  %v711_v50 = vmul.f32 %v707_v54, %v1437_v55  ;;  %800 = vmatprep.subr.bf16.mxu0 %v769_v35  ;;  %v749_v18 = vpop.permute.xlu0 %748 }
 0x389   :  { %801 = vmatpush1.bf16.msra.mxu0 %v768_v63 }
 0x38a   :  { %v770_v41 = vpack.c.bf16 %v710_v31, %v1537_v12  ;;  %v717_v8 = vpop.permute.xlu1 %716  ;;  %v771_v52 = vpack.c.bf16 %v711_v50, %v1553_v59  ;;  %v722_v12 = vsel %vm283_vm7, %v713_v33, %v715_v45 }
 0x38b   :  { %v721_v46 = vsel %vm283_vm7, %v715_v45, %v717_v8  ;;  %v724_v61 = vmul.f32 %v722_v12, %v1429_v17  ;;  %v727_v17 = vmul.f32 %v723_v14, %v1467_v7 }
 0x38c   :  { %841 = vmatprep.subr.bf16.mxu1 %v771_v52  ;;  %v725_v49 = vmul.f32 %v721_v46, %v1421_v22 }
 0x38d   :  { %842 = vmatpush1.bf16.msra.mxu1 %v770_v41 }
 0x38e   :  { %v733_v23 = vpop.permute.xlu1 %732 }
 0x38f   :  { %v737_v26 = vsel %vm321_vm6, %v731_v5, %v733_v23 }
 0x390   :  { %v741_v55 = vmul.f32 %v737_v26, %v1379_v42  ;;  %v720_v42 = vsel %vm283_vm7, %v717_v8, %v719_v60  ;;  %v574_v60 = vld [vmem:[%s1739_s3] sm:$0xff]  ;;  %s1069_s3 = smov [#allocation7]  }
 0x391   :  { %v726_v45 = vmul.f32 %v720_v42, %v1464_v29 }
 0x392   :  { %v729_v37 = vpop.permute.xlu1 %728  ;;  %v773_v39 = vpack.c.bf16 %v741_v55, %v725_v49 }
 0x393   :  { %v738_v59 = vsel %vm321_vm6, %v729_v37, %v731_v5 }
 0x394   :  { %v740_v32 = vmul.f32 %v738_v59, %v1404_v44  ;;  %802 = vmatprep.subr.bf16.mxu0 %v773_v39  ;;  %v878_v59 = vld [vmem:[%s1742_s6] sm:$0xff]  ;;  %s939_s6 = sshll.u32 %s1069_s3, 4  ;;  %s940_s6 = int_to_ptr.vmem [resolvable:$true] %s939_s6 }
 0x395   :  { %p1035_p3 = scmp.lt.s32.totalorder %s940_s6, %s940_s6 }
 0x396   :  { %v772_v22 = vpack.c.bf16 %v740_v32, %v724_v61  ;;  %v735_v25 = vpop.permute.xlu1 %734  ;;  %v879_v32 = vld [vmem:[%s1743_s7] sm:$0xff]  ;;  %s1030_s7 = scalar_lea.vmem %s940_s6, 512 }
 0x397   :  { %v736_v28 = vsel %vm321_vm6, %v733_v23, %v735_v25  ;;  %v739_v40 = vsel %vm321_vm6, %v735_v25, %v729_v37  ;;  %p1031_p2 = scmp.ne.s32.totalorder %s940_s6, %s1030_s7  ;;  %p1036_p4 = scmp.lt.s32.totalorder %s1030_s7, %s1030_s7 }
 0x398   :  { %v742_v44 = vmul.f32 %v736_v28, %v1441_v57  ;;  %v743_v24 = vmul.f32 %v739_v40, %v1448_v21  ;;  %803 = vmatpush1.bf16.msra.mxu0 %v772_v22 }
 0x399   :  { %p1037_p5 = por %p1036_p4, %p1035_p3 }
 0x39a   :  { %v774_v30 = vpack.c.bf16 %v742_v44, %v726_v45  ;;  %v747_v19 = vpop.permute.xlu1 %746  ;;  %v775_v3 = vpack.c.bf16 %v743_v24, %v727_v17 }
 0x39b   :  { %v753_v4 = vsel %vm359_vm8, %v747_v19, %v749_v18  ;;  %v754_v51 = vsel %vm359_vm8, %v745_v62, %v747_v19  ;;  %p1038_p6 = pnand %p1037_p5, %p1031_p2 }
 0x39c   :  { %v756_v48 = vmul.f32 %v754_v51, %v1472_v47  ;;  %v757_v7 = vmul.f32 %v753_v4, %v1495_v11  ;;  %843 = vmatprep.subr.bf16.mxu1 %v775_v3  ;;  %v631_v11 = vld [vmem:[#allocation5] sm:$0xf] }
 0x39d   :  { %844 = vmatpush1.bf16.msra.mxu1 %v774_v30 }
 0x39e   :  { %v776_v57 = vpack.c.bf16 %v756_v48, %v756_v48  ;;  %v777_v29 = vpack.c.bf16 %v757_v7, %v757_v7  ;;  %v751_v21 = vpop.permute.xlu1 %750 }
 0x39f   :  { %v752_v58 = vsel %vm359_vm8, %v749_v18, %v751_v21  ;;  %v755_v34 = vsel %vm359_vm8, %v751_v21, %v745_v62 }
 0x3a0   :  { %v758_v1 = vmul.f32 %v752_v58, %v1498_v0  ;;  %v759_v5 = vmul.f32 %v755_v34, %v1488_v15  ;;  %961 = vmatprep.subr.msk.bf16.mxu0 %vm437_vm4, %v777_v29  ;;  %v785_v47 = vsel %vm437_vm4, %v776_v57, 0 }
 0x3a1   :  { %805 = vmatpush1.bf16.msra.mxu0 %v785_v47 }
 0x3a2   :  { %v778_v56 = vpack.c.bf16 %v758_v1, %v758_v1  ;;  %v779_v16 = vpack.c.bf16 %v759_v5, %v759_v5 }
 0x3a4   :  { %962 = vmatmul.mubr.msk.bf16.vlgmr.msra.gmra.mrb[4].mxu0 %vm780_vm11, %v631_v11  ;;  %963 = vmatprep.subr.msk.bf16.mxu1 %vm437_vm4, %v779_v16  ;;  %v791_v36 = vsel %vm437_vm4, %v778_v56, 0 }
 0x3a5   :  { %846 = vmatpush1.bf16.msra.mxu1 %v791_v36 }
 0x3a8   :  { %964 = vmatmul.mubr.msk.bf16.vlgmr.msra.gmra.mrb[4].mxu1 %vm780_vm11, %v631_v11 }
 0x477   :  { %v830_v9 = vpop.f32.mrb[4].mxu0 }
 0x478   :  { %v885_v0 = vmul.f32 %v830_v9, %v830_v9  ;;  %v832_v2 = vpop.f32.mrb[5].mxu0 }
 0x479   :  { %v880_v15 = vadd.f32 %v832_v2, %v830_v9  ;;  %v886_v43 = vmul.f32 %v832_v2, %v832_v2  ;;  %v834_v38 = vpop.f32.mrb[6].mxu0 }
 0x47a   :  { %v835_v20 = vpop.f32.mrb[7].mxu0 }
 0x47b   :  { %v871_v35 = vpop.f32.mrb[4].mxu1  ;;  %v889_v63 = vadd.f32 %v886_v43, %v885_v0 }
 0x47c   :  { %v887_v6 = vmul.f32 %v871_v35, %v871_v35  ;;  %v873_v54 = vpop.f32.mrb[5].mxu1  ;;  %v881_v33 = vadd.f32 %v880_v15, %v871_v35 }
 0x47d   :  { %v875_v31 = vpop.f32.mrb[6].mxu1  ;;  %v888_v50 = vmul.f32 %v873_v54, %v873_v54 }
 0x47e   :  { %v876_v41 = vpop.f32.mrb[7].mxu1  ;;  %v882_v8 = vadd.f32 %v881_v33, %v873_v54  ;;  %v890_v52 = vadd.f32 %v889_v63, %v887_v6 }
 0x480   :  { %883 = vadd.xlane.f32.xlu0 %v882_v8  ;;  %v891_v46 = vadd.f32 %v890_v52, %v888_v50 }
 0x482   :  { %892 = vadd.xlane.f32.xlu1 %v891_v46 }
 0x493   :  { %577 = vperm.xlu1 %978, %v574_v60  }
 0x50d   :  { %v884_v23 = vpop.xlane.xlu0 %883 }
 0x50e   :  { %v894_v26 = vmul.f32 0.001953125, %v884_v23 }
 0x50f   :  { %v893_v49 = vpop.xlane.xlu1 %892 }
 0x510   :  { %v896_v55 = vmul.f32 %v894_v26, %v894_v26  ;;  %v895_v12 = vmul.f32 0.001953125, %v893_v49 }
 0x512   :  { %v897_v37 = vsub.f32 %v895_v12, %v896_v55 }
 0x513   :  { %v578_v25 = vpop.permute.xlu1 %577 }
 0x514   :  { %v898_v39 = vadd.f32 1e-05, %v897_v37  ;;  %v580_v44 = vadd.f32 %v578_v25, %v1521_v53  ;;  %v581_v24 = vadd.f32 %v578_v25, %v1525_v13  ;;  %v582_v18 = vadd.f32 %v578_v25, %v1523_v27 }
 0x515   :  { %v583_v30 = vadd.f32 %v578_v25, %v1527_v10 }
 0x516   :  { %984 = vrsqrt.f32 %v898_v39 }
 0x520   :  { %v985_v61 = vpop.eup %984 }
 0x521   :  { %v900_v62 = vmul.f32 %v985_v61, %v878_v59 }
 0x523   :  { %905 = vperm.xlu0 %977, %v900_v62   ;;  %v901_v14 = vmul.f32 %v900_v62, %v894_v26 }
 0x525   :  { %v902_v42 = vsub.f32 %v879_v32, %v901_v14 }
 0x527   :  { %914 = vperm.xlu0 %977, %v902_v42  }
 0x5a2   :  { %v906_v22 = vpop.permute.xlu0 %905 }
 0x5a3   :  { %v908_v28 = vmul.f32 %v906_v22, %v830_v9  ;;  %v909_v40 = vmul.f32 %v906_v22, %v832_v2  ;;  %v910_v17 = vmul.f32 %v906_v22, %v871_v35  ;;  %v911_v45 = vmul.f32 %v906_v22, %v873_v54 }
 0x5a6   :  { %v915_v19 = vpop.permute.xlu0 %914 }
 0x5a7   :  { %v917_v3 = vadd.f32 %v915_v19, %v908_v28  ;;  %v918_v4 = vadd.f32 %v915_v19, %v909_v40  ;;  %v919_v51 = vadd.f32 %v915_v19, %v910_v17  ;;  %v920_v48 = vadd.f32 %v915_v19, %v911_v45 }
 0x5a9   :  { %v921_v7 = vadd.f32 %v917_v3, %v580_v44  ;;  %v922_v57 = vadd.f32 %v918_v4, %v581_v24  ;;  %v923_v29 = vadd.f32 %v919_v51, %v582_v18  ;;  %v924_v21 = vadd.f32 %v920_v48, %v583_v30 }
 0x5ab   :  { %v925_v58 = vmax.f32 %v921_v7, 0.0  ;;  %v926_v34 = vmax.f32 %v922_v57, 0.0  ;;  %v927_v53 = vmax.f32 %v923_v29, 0.0  ;;  %v928_v1 = vmax.f32 %v924_v21, 0.0 }
 0x5ad   :  { %929 = vst [vmem:[#allocation7] sm:$0xff] %v925_v58  ;;  %930 = vst [vmem:[#allocation7 + $0x8] sm:$0xff] %v926_v34 }
 0x5ae   :  { %931 = vst [vmem:[#allocation7 + $0x10] sm:$0xff] %v927_v53  ;;  %932 = vst [vmem:[#allocation7 + $0x18] sm:$0xff] %v928_v1 }
 0x5af   :  { %1041 = shalt.err (!%p1038_p6)
}
 0x5b0   :  { %s1042_s16 = scalar_lea.hbm %s1745_s9, 512 }
 0x5b1   :  { %p1043_p7 = scmp.ne.s32.totalorder %s1745_s9, %s1042_s16  ;;  %p1046_p8 = scmp.lt.u32.totalorder %s1042_s16, %s1745_s9 }
 0x5b3   :  { %p1048_p9 = pnand %p1046_p8, %p1043_p7 }
 0x5b5   :  { %1051 = shalt.err (!%p1048_p9)
}
 0x5b6   :  { %942 = dma.vmem_to_hbm [thread:$0]  %s940_s6, 512, %s1745_s9, [#allocation4]  }
 0x5b7   :  { %1056 = dma.done.wait [#allocation4], 512  }
 0x5b8   :  { %1057 = vsyncadd [#allocation4], 4294966784 }
 0x5b9   :  { %946 = vsyncpa [#allocation3], 1 }
 0x5ba   :  { %947 = vsyncpa [#allocation6], 1 }
 0x5bb   :  { %948 = vsyncpa [#allocation4], 1 }

</bundles_post_ra>
